<compile_context>
chip_gen: v6e
topology: v6e:2x2x1
jax: 0.10.0
libtpu: 0.0.40
codegen_flags: <defaults>
</compile_context>

<pallas_src>
import itertools
import numpy as np
import jax
import jax.numpy as jnp
from jax.experimental import pallas as pl
from jax.experimental.pallas import tpu as pltpu


# --------------------------------------------------------------------------
# small helpers
# --------------------------------------------------------------------------
def _round_up(x, m):
    return ((x + m - 1) // m) * m


def _tile_and_pad(dim, target, min_tiles=1):
    """Pick a lane-aligned (multiple-of-128) tile <= target, then pad `dim` up
    to a multiple of the tile.  Padding (zeros in S / features) is cheap;
    falling back to 128-wide tiles is not.  `min_tiles >= 2` keeps both v7x
    TensorCores busy on 'parallel' axes when B == 1."""
    dim128 = _round_up(max(int(dim), 1), 128)
    tile = max(128, min(_round_up(int(target), 128), dim128))
    if min_tiles > 1:
        while tile > 128 and (dim128 + tile - 1) // tile < min_tiles:
            tile -= 128
    padded = _round_up(dim128, tile)
    return tile, padded


# --------------------------------------------------------------------------
# Host-side lattice construction (deterministic numpy glue, not the hot path)
# --------------------------------------------------------------------------
def _build_lattice_single(pos, n):
    """pos: (P, d) float64, already scaled by pos_lambda.

    Returns:
      idx   (P, d+1) int   : lattice-table index of each enclosing vertex
      bary  (P, d+1) f32   : barycentric weight of each enclosing vertex
      neigh (L, K)   int   : for every lattice point, index of each conv
                             neighbor in the table (-1 if absent)
    """
    P, d = pos.shape
    inv_std = np.sqrt(2.0 / 3.0) * (d + 1)
    scale = np.array([inv_std / np.sqrt((i + 1) * (i + 2)) for i in range(d)])
    cf = pos * scale[None, :]

    # elevate onto the hyperplane H_d (Adams et al.)
    elevated = np.zeros((P, d + 1))
    sm = np.zeros(P)
    for i in range(d, 0, -1):
        c = cf[:, i - 1]
        elevated[:, i] = sm - i * c
        sm = sm + c
    elevated[:, 0] = sm

    down = 1.0 / (d + 1)
    up = float(d + 1)
    rd = np.rint(elevated * down)
    rem0 = rd * up
    sum_rd = rd.sum(axis=1).astype(np.int64)

    # rank the differentials
    diff = elevated - rem0
    rank = np.zeros((P, d + 1), dtype=np.int64)
    for i in range(d + 1):
        for j in range(i + 1, d + 1):
            cond = diff[:, i] < diff[:, j]
            rank[:, i] += cond
            rank[:, j] += ~cond
    rank = rank + sum_rd[:, None]
    lo = rank < 0
    hi = rank > d
    rank = rank + (d + 1) * lo - (d + 1) * hi
    rem0 = rem0 + (d + 1) * lo - (d + 1) * hi

    # barycentric coordinates
    bary = np.zeros((P, d + 2))
    delta = (elevated - rem0) * down
    rows = np.arange(P)
    for i in range(d + 1):
        np.add.at(bary, (rows, d - rank[:, i]), delta[:, i])
        np.add.at(bary, (rows, d + 1 - rank[:, i]), -delta[:, i])
    bary[:, 0] += 1.0 + bary[:, d + 1]
    bary = bary[:, : d + 1]

    # keys of the d+1 enclosing vertices (canonical simplex)
    rem0_i = np.rint(rem0).astype(np.int64)
    keys = np.zeros((P, d + 1, d + 1), dtype=np.int64)
    for k in range(d + 1):
        cano = np.where(rank <= d - k, k, k - (d + 1))
        keys[:, k, :] = rem0_i + cano

    flat = keys.reshape(-1, d + 1)
    uniq, inv = np.unique(flat, axis=0, return_inverse=True)
    idx = inv.reshape(P, d + 1)
    L = uniq.shape[0]

    # conv neighborhood: offsets = sum_j c_j - (d+1) c, c in {0..n}^(d+1), min(c)=0
    offsets = []
    for c in itertools.product(range(n + 1), repeat=d + 1):
        if min(c) != 0:
            continue
        c = np.array(c, dtype=np.int64)
        offsets.append(int(c.sum()) * np.ones(d + 1, dtype=np.int64) - (d + 1) * c)
    offsets = np.stack(offsets)  # (K, d+1)
    K = offsets.shape[0]

    table = {tuple(r): i for i, r in enumerate(uniq)}
    neigh = np.full((L, K), -1, dtype=np.int64)
    for l in range(L):
        base = uniq[l]
        for k in range(K):
            neigh[l, k] = table.get(tuple(base + offsets[k]), -1)
    return idx, bary.astype(np.float32), neigh


# --------------------------------------------------------------------------
# Pallas kernels (the hot path)
# --------------------------------------------------------------------------
def _splat_kernel(f_ref, s_ref, v_ref, acc_ref):
    # f_ref: (1, Caug, tp) bf16   s_ref: (1, tl, tp) bf16
    # v_ref: (1, Caug, tl) f32    acc_ref: (Caug, tl) f32
    @pl.when(pl.program_id(2) == 0)
    def _():
        acc_ref[...] = jnp.zeros_like(acc_ref)

    # V += f_tile @ S_tile^T  (contract the point axis).  Last-last contraction
    # is the canonical q @ k^T MXU idiom: the transposed operand is the RHS,
    # whose transpose is native to the MXU weight-load path, so the big S tile
    # never goes through the XLU.
    acc_ref[...] += jax.lax.dot_general(
        f_ref[0], s_ref[0],
        dimension_numbers=(((1,), (1,)), ((), ())),
        preferred_element_type=jnp.float32)

    @pl.when(pl.program_id(2) == pl.num_programs(2) - 1)
    def _():
        v_ref[0] = acc_ref[...]


def _splat(f_aug_b16, s_b16, tl, tp, vmem_limit):
    B, Caug, P_pad = f_aug_b16.shape
    L_pad = s_b16.shape[1]
    grid = (B, L_pad // tl, P_pad // tp)
    return pl.pallas_call(
        _splat_kernel,
        out_shape=jax.ShapeDtypeStruct((B, Caug, L_pad), jnp.float32),
        grid=grid,
        in_specs=[
            pl.BlockSpec((1, Caug, tp), lambda b, lt, pt: (b, 0, pt)),
            pl.BlockSpec((1, tl, tp), lambda b, lt, pt: (b, lt, pt)),
        ],
        # FIX: the L block index targets the last (lane) output axis.
        out_specs=pl.BlockSpec((1, Caug, tl), lambda b, lt, pt: (b, 0, lt)),
        scratch_shapes=[pltpu.VMEM((Caug, tl), jnp.float32)],
        compiler_params=pltpu.CompilerParams(
            dimension_semantics=("parallel", "parallel", "arbitrary"),
            vmem_limit_bytes=vmem_limit),
    )(f_aug_b16, s_b16)


def _make_slice_kernel(norm_row):
    def kernel(w_ref, s_ref, b_ref, o_ref, acc_ref):
        # w_ref: (1, Raug, tl) bf16   s_ref: (1, tl, tp) bf16
        # b_ref: (Raug, 1) f32        o_ref: (1, Raug, tp) f32
        # acc_ref: (Raug, tp) f32
        @pl.when(pl.program_id(2) == 0)
        def _():
            acc_ref[...] = jnp.zeros_like(acc_ref)

        # single matmul streams S once: feature rows AND the norm row together
        acc_ref[...] += jnp.dot(w_ref[0], s_ref[0],
                                preferred_element_type=jnp.float32)

        @pl.when(pl.program_id(2) == pl.num_programs(2) - 1)
        def _():
            acc = acc_ref[...]
            norm = acc[norm_row:norm_row + 1, :]               # (1, tp)
            # norm == 0 only on padded point columns (real points have strictly
            # positive norm); padded columns are sliced off outside.
            inv = pl.reciprocal(jnp.where(norm == 0.0, 1.0, norm), approx=False)
            o_ref[0] = acc * inv + b_ref[...]
    return kernel


def _slice_normalize(blur_aug_b16, s_b16, bias_pad, norm_row, tl, tp, vmem_limit):
    B, Raug, L_pad = blur_aug_b16.shape
    P_pad = s_b16.shape[2]
    grid = (B, P_pad // tp, L_pad // tl)
    return pl.pallas_call(
        _make_slice_kernel(norm_row),
        out_shape=jax.ShapeDtypeStruct((B, Raug, P_pad), jnp.float32),
        grid=grid,
        in_specs=[
            pl.BlockSpec((1, Raug, tl), lambda b, pt, lt: (b, 0, lt)),
            pl.BlockSpec((1, tl, tp), lambda b, pt, lt: (b, lt, pt)),
            pl.BlockSpec((Raug, 1), lambda b, pt, lt: (0, 0)),
        ],
        out_specs=pl.BlockSpec((1, Raug, tp), lambda b, pt, lt: (b, 0, pt)),
        scratch_shapes=[pltpu.VMEM((Raug, tp), jnp.float32)],
        compiler_params=pltpu.CompilerParams(
            dimension_semantics=("parallel", "parallel", "arbitrary"),
            vmem_limit_bytes=vmem_limit),
    )(blur_aug_b16, s_b16, bias_pad)


# --------------------------------------------------------------------------
# Module forward (PermutohedralLattice.forward, keep_position path)
# --------------------------------------------------------------------------
def permutohedral_lattice_forward(features_in, position_in, weights, bias,
                                  pos_lambda, n=1, tile_l=2048, tile_p=2048,
                                  vmem_limit_bytes=48 * 1024 * 1024,
                                  return_aux=False):
    """features_in (B, df_in, P), position_in (B, P, d),
       weights (df_out, df_in, K), bias (1, df_out, 1) or None."""
    B, df_in, P0 = features_in.shape
    d = position_in.shape[-1]
    df_out, _, K = weights.shape
    assert K == (n + 1) ** (d + 1) - n ** (d + 1)

    # ---- host-side lattice glue (hashing / dedup / neighbor lookup) ----
    pos = np.asarray(position_in, dtype=np.float64) * float(pos_lambda)
    per = [_build_lattice_single(pos[b], n) for b in range(B)]
    L_max = max(p[2].shape[0] for p in per)

    # pick tiles first, then pad dims up to a tile multiple (padding is cheap,
    # 128-wide fallback tiles are not).  With B == 1, keep >=2 tiles on the
    # parallel axes so both v7x TensorCores get work.
    min_tiles = 2 if B == 1 else 1
    tl, L_pad = _tile_and_pad(L_max, tile_l, min_tiles)
    tp, P_pad = _tile_and_pad(P0, tile_p, min_tiles)

    # dense splat matrix S[b] (L_pad, P_pad): S[l, p] = sum_r bary[p,r]*[idx[p,r]==l]
    # TODO(synk): sparse splat/slice (d+1 nonzeros per column) + int8/fp8 S
    #             storage would cut the dominant HBM stream by >= 2x.
    S_np = np.zeros((B, L_pad, P_pad), np.float32)
    neigh_np = np.full((B, L_pad, K), -1, np.int32)
    for b in range(B):
        idx_b, bary_b, neigh_b = per[b]
        for r in range(d + 1):
            np.add.at(S_np[b], (idx_b[:, r], np.arange(P0)), bary_b[:, r])
        neigh_np[b, :neigh_b.shape[0], :] = neigh_b

    # single S layout in HBM; bf16 MXU operands, f32 accumulation in-kernel
    S_b16 = jnp.asarray(S_np, jnp.bfloat16)                      # (B, L_pad, P_pad)
    neigh_j = jnp.asarray(neigh_np)                              # (B, L_pad, K)

    # homogeneous features, channel rows padded to 16 (bf16 sublane density)
    Caug = _round_up(df_in + 1, 16)
    f_aug = jnp.zeros((B, Caug, P_pad), jnp.float32)
    f_aug = f_aug.at[:, :df_in, :P0].set(features_in.astype(jnp.float32))
    f_aug = f_aug.at[:, df_in, :P0].set(1.0)                     # ones channel
    f_aug_b16 = f_aug.astype(jnp.bfloat16)

    # ---- 1. splat (tiled Pallas matmul) ----
    V = _splat(f_aug_b16, S_b16, tl, tp, vmem_limit_bytes)       # (B, Caug, L_pad) f32
    Vf = V[:, :df_in, :]
    V1 = V[:, df_in, :]                                          # (B, L_pad)

    # ---- 2. lattice conv ("blur"): per-neighbor gather + small matmul ----
    # Scanned over K so only a (df_in, L_pad) working set exists per step.
    # TODO(synk): fuse into a Pallas kernel (V resident in VMEM, neigh via
    #             scalar prefetch / SMEM) to drop the XLA gather entirely.
    valid = neigh_j >= 0
    nc = jnp.where(valid, neigh_j, 0)
    W_k = jnp.transpose(weights.astype(jnp.float32), (2, 0, 1))  # (K, df_out, df_in)

    def blur_b(vf_b, nc_b, valid_b):
        def step(acc, xs):
            w_k, nc_k, val_k = xs                                # (o,i), (L,), (L,)
            g = jnp.where(val_k[None, :], jnp.take(vf_b, nc_k, axis=1), 0.0)
            return acc + w_k @ g, None
        init = jnp.zeros((df_out, vf_b.shape[1]), jnp.float32)
        acc, _ = jax.lax.scan(step, init, (W_k, nc_b.T, valid_b.T))
        return acc

    blur = jax.vmap(blur_b)(Vf, nc, valid)                       # (B, df_out, L_pad)

    # ---- 3. fold ones-channel (norm) in as one extra row of the slice matmul ----
    Raug = _round_up(df_out + 1, 16)
    norm_row = df_out
    blur_aug = jnp.zeros((B, Raug, L_pad), jnp.float32)
    blur_aug = blur_aug.at[:, :df_out, :].set(blur)
    blur_aug = blur_aug.at[:, norm_row, :].set(V1)
    blur_aug_b16 = blur_aug.astype(jnp.bfloat16)

    bias_pad = jnp.zeros((Raug, 1), jnp.float32)
    if bias is not None:
        bias_pad = bias_pad.at[:df_out, :].set(
            jnp.asarray(bias, jnp.float32).reshape(df_out, 1))

    # ---- 4. slice + normalize + bias (tiled Pallas) ----
    out_full = _slice_normalize(blur_aug_b16, S_b16, bias_pad, norm_row,
                                tl, tp, vmem_limit_bytes)        # (B, Raug, P_pad)
    out = out_full[:, :df_out, :P0]

    if not return_aux:
        return out

    # debug-only: forces device->host copies of the dense operands
    aux = dict(S=np.asarray(S_b16).astype(np.float32),
               f_aug=np.asarray(f_aug_b16).astype(np.float32),
               blur_aug=np.asarray(blur_aug_b16).astype(np.float32),
               bias_pad=np.asarray(bias_pad),
               V=np.asarray(V), norm_row=norm_row, P0=P0, df_out=df_out)
    return out, aux


# --------------------------------------------------------------------------
if __name__ == "__main__":
    B, df_in, df_out, d, P0 = 2, 4, 8, 3, 200
    n = 1
    pos_lambda = 1.0
    K = (n + 1) ** (d + 1) - n ** (d + 1)   # 15

    key = jax.random.PRNGKey(0)
    k1, k2, k3 = jax.random.split(key, 3)
    features_in = jax.random.normal(k1, (B, df_in, P0), jnp.float32)
    position_in = jax.random.normal(k2, (B, P0, d), jnp.float32)
    # deterministic "reset_parameters": weights ~ N(0, 0.01), bias = 0
    weights = 0.01 * jax.random.normal(k3, (df_out, df_in, K), jnp.float32)
    bias = jnp.zeros((1, df_out, 1), jnp.float32)

    # small tile targets so the toy shapes still exercise multi-tile L and the
    # multi-step accumulate path (production defaults are 2048/2048)
    out, aux = permutohedral_lattice_forward(features_in, position_in, weights,
                                             bias, pos_lambda, n=n,
                                             tile_l=256, tile_p=128,
                                             return_aux=True)
    out = jax.block_until_ready(out)
    assert out.shape == (B, df_out, P0)

    # numpy reference of the same splat / slice / normalize math, built from
    # the exact (bf16-rounded) operands fed to the Pallas kernels.
    S32 = aux["S"]; F32 = aux["f_aug"]; BA32 = aux["blur_aug"]
    b32 = aux["bias_pad"]; norm_row = aux["norm_row"]

    # splat check
    V_ref = np.einsum('bcp,blp->bcl', F32, S32)
    np.testing.assert_allclose(aux["V"], V_ref, rtol=1e-2, atol=1e-3)

    # slice + normalize + bias check
    full_ref = np.einsum('brl,blp->brp', BA32, S32)
    norm = full_ref[:, norm_row:norm_row + 1, :]
    norm = np.where(norm == 0.0, 1.0, norm)
    ref = (full_ref / norm + b32[None])[:, :df_out, :P0]
    np.testing.assert_allclose(np.asarray(out), ref, rtol=2e-2, atol=2e-3)

    print("KERNEL_OK")
</pallas_src>

<mosaic_0001>
module attributes {stable_mosaic.version = 11 : i64} {
  func.func @_splat_kernel(%arg0: i32, %arg1: i32, %arg2: i32, %arg3: memref<1x16x128xbf16, #tpu.memory_space<vmem>>, %arg4: memref<1x256x128xbf16, #tpu.memory_space<vmem>>, %arg5: memref<1x16x256xf32, #tpu.memory_space<vmem>>, %arg6: memref<16x256xf32, #tpu.memory_space<vmem>>) attributes {dimension_semantics = [#tpu.dimension_semantics<parallel>, #tpu.dimension_semantics<parallel>, #tpu.dimension_semantics<arbitrary>], iteration_bounds = array<i64: 2, 1, 2>, scalar_prefetch = 0 : i64, scratch_operands = 1 : i64, tpu.core_type = #tpu.core_type<tc>, window_params = [{transform_indices = @transform_0, window_bounds = array<i64: 1, 16, 128>}, {transform_indices = @transform_1, window_bounds = array<i64: 1, 256, 128>}, {transform_indices = @transform_2, window_bounds = array<i64: 1, 16, 256>}]} {
    %c0_i32 = arith.constant 0 : i32
    %0 = arith.cmpi eq, %arg2, %c0_i32 : i32
    %1 = arith.extui %0 : i1 to i32
    %c0_i32_0 = arith.constant 0 : i32
    %2 = arith.cmpi ne, %1, %c0_i32_0 : i32
    scf.if %2 {
      %cst_11 = arith.constant 0.000000e+00 : f32
      %14 = vector.broadcast %cst_11 : f32 to vector<16x256xf32>
      %c0_12 = arith.constant 0 : index
      %c0_13 = arith.constant 0 : index
      %15 = vector.load %arg6[%c0_12, %c0_13] : memref<16x256xf32, #tpu.memory_space<vmem>>, vector<16x256xf32>
      tpu.vector_store %arg6[%c0_12, %c0_13], %14 {strides = array<i32>} : memref<16x256xf32, #tpu.memory_space<vmem>>, vector<16x256xf32>,
    } else {
    }
    %c0 = arith.constant 0 : index
    %c0_1 = arith.constant 0 : index
    %3 = vector.load %arg6[%c0, %c0_1] : memref<16x256xf32, #tpu.memory_space<vmem>>, vector<16x256xf32>
    %c0_2 = arith.constant 0 : index
    %c0_3 = arith.constant 0 : index
    %c0_4 = arith.constant 0 : index
    %4 = vector.load %arg3[%c0_2, %c0_3, %c0_4] : memref<1x16x128xbf16, #tpu.memory_space<vmem>>, vector<1x16x128xbf16>
    %5 = vector.shape_cast %4 : vector<1x16x128xbf16> to vector<16x128xbf16>
    %c0_5 = arith.constant 0 : index
    %c0_6 = arith.constant 0 : index
    %c0_7 = arith.constant 0 : index
    %6 = vector.load %arg4[%c0_5, %c0_6, %c0_7] : memref<1x256x128xbf16, #tpu.memory_space<vmem>>, vector<1x256x128xbf16>
    %7 = vector.shape_cast %6 : vector<1x256x128xbf16> to vector<256x128xbf16>
    %cst = arith.constant dense<0.000000e+00> : vector<16x256xf32>
    %8 = tpu.matmul %5, %7, %cst {dimension_numbers = #tpu.dot_dimension_numbers<[1], [1], [0], [0], [0, 0, 1, 0], [], []>} : vector<16x128xbf16>, vector<256x128xbf16>, vector<16x256xf32> -> vector<16x256xf32>
    %9 = arith.addf %3, %8 : vector<16x256xf32>
    %c0_8 = arith.constant 0 : index
    %c0_9 = arith.constant 0 : index
    %10 = vector.load %arg6[%c0_8, %c0_9] : memref<16x256xf32, #tpu.memory_space<vmem>>, vector<16x256xf32>
    tpu.vector_store %arg6[%c0_8, %c0_9], %9 {strides = array<i32>} : memref<16x256xf32, #tpu.memory_space<vmem>>, vector<16x256xf32>,
    %c1_i32 = arith.constant 1 : i32
    %11 = arith.cmpi eq, %arg2, %c1_i32 : i32
    %12 = arith.extui %11 : i1 to i32
    %c0_i32_10 = arith.constant 0 : i32
    %13 = arith.cmpi ne, %12, %c0_i32_10 : i32
    scf.if %13 {
      %c0_11 = arith.constant 0 : index
      %c0_12 = arith.constant 0 : index
      %14 = vector.load %arg6[%c0_11, %c0_12] : memref<16x256xf32, #tpu.memory_space<vmem>>, vector<16x256xf32>
      %c0_13 = arith.constant 0 : index
      %c0_14 = arith.constant 0 : index
      %c0_15 = arith.constant 0 : index
      %15 = vector.load %arg5[%c0_13, %c0_14, %c0_15] : memref<1x16x256xf32, #tpu.memory_space<vmem>>, vector<1x16x256xf32>
      %16 = vector.shape_cast %15 : vector<1x16x256xf32> to vector<16x256xf32>
      %17 = vector.shape_cast %14 : vector<16x256xf32> to vector<1x16x256xf32>
      tpu.vector_store %arg5[%c0_13, %c0_14, %c0_15], %17 {strides = array<i32>} : memref<1x16x256xf32, #tpu.memory_space<vmem>>, vector<1x16x256xf32>,
    } else {
    }
    return
  }
  func.func @transform_0(%arg0: i32, %arg1: i32, %arg2: i32) -> (i32, i32, i32) {
    %c0_i32 = arith.constant 0 : i32
    %c0_i32_0 = arith.constant 0 : i32
    return %arg0, %c0_i32, %arg2 : i32, i32, i32
  }
  func.func @transform_1(%arg0: i32, %arg1: i32, %arg2: i32) -> (i32, i32, i32) {
    %c0_i32 = arith.constant 0 : i32
    return %arg0, %arg1, %arg2 : i32, i32, i32
  }
  func.func @transform_2(%arg0: i32, %arg1: i32, %arg2: i32) -> (i32, i32, i32) {
    %c0_i32 = arith.constant 0 : i32
    %c0_i32_0 = arith.constant 0 : i32
    return %arg0, %c0_i32, %arg1 : i32, i32, i32
  }
}

</mosaic_0001>

<bundles_post_ra>
// kernel: tpu_custom_call.1
= control target key start
LH: loop header
LB: loop body
LE: loop exit
PB: predicated region body
PF: predicated region fallthrough
CT: control target
= control target key end

     0   :  { %s1236_s0 = inlined_call_operand.hbm [shape: bf16[2,16,256], index: 0, kind: input, shape index: {}]   ;;  %s1237_s1 = inlined_call_operand.hbm [shape: bf16[2,256,256], index: 1, kind: input, shape index: {}]   ;;  %s1238_s2 = inlined_call_operand.hbm [shape: f32[2,16,256], index: 2, kind: output, shape index: {}]  }
   0x1   :  { %1245 = sst [smem:[#allocation20_spill]] %s1236_s0 }
   0x2   :  { %7 = vsyncpa [#allocation4], 0 }
   0x3   :  { %9 = vsyncpa [#allocation4 + $0x1], 0 }
   0x4   :  { %10 = vsyncpa [#allocation7], 0 }
   0x5   :  { %12 = vsyncpa [#allocation7 + $0x1], 0 }
   0x6   :  { %13 = vsyncpa [#allocation5], 0 }
   0x7   :  { %15 = vsyncpa [#allocation5 + $0x1], 0  ;;  %s976_s9 = smov 0   ;;  %s978_s10 = smov 0  }
   0x8   :  { %s980_s11 = smov 0   ;;  %s982_s12 = smov 0  }
   0x9   :  { %s984_s13 = smov 0   ;;  %s986_s14 = smov 0  }
   0xa   :  { %s988_s15 = smov 0   ;;  %s990_s16 = smov 0  }
   0xb   :  { %s992_s17 = smov 0   ;;  %s994_s18 = smov 0  }
   0xc   :  { %s996_s19 = smov 0  }
   0xd LB: > { %1246 = sst [smem:[#allocation12_spill]] %s910_s9  ;;  %s583_s20 = sadd.s32 4294967295, %s950_s19   ;;  %s950_s19 = sphi %s996_s19, %s21_s19   ;;  %s946_s18 = sphi %s994_s18, %s1276_s18   ;;  %s942_s17 = sphi %s992_s17, %s1275_s17   ;;  %s938_s16 = sphi %s990_s16, %s1274_s16   ;;  %s934_s15 = sphi %s988_s15, %s1273_s15   ;;  %s930_s14 = sphi %s986_s14, %s1266_s14   ;;  %s926_s13 = sphi %s984_s13, %s1272_s13   ;;  %s922_s12 = sphi %s982_s12, %s1271_s12   ;;  %s918_s11 = sphi %s980_s11, %s1264_s11   ;;  %s914_s10 = sphi %s978_s10, %s1270_s10   ;;  %s910_s9 = sphi %s976_s9, %s1269_s9  }
   0xe   : > { %1247 = sst [smem:[#allocation13_spill]] %s918_s11  ;;  %s584_s21 = sadd.s32 4294967294, %s950_s19  }
   0xf   : > { %1248 = sst [smem:[#allocation14_spill]] %s930_s14  ;;  %s33_s22 = sadd.s32 1, %s942_s17 }
  0x10   : > { %s40_s23 = sadd.s32 1, %s946_s18  ;;  %p34_p0 = scmp.ge.s32.totalorder %s33_s22, 2 }
  0x11   : > { %s49_s24 = sadd.s32 1, %s930_s14  ;;  %p56_p1 = scmp.ne.s32.totalorder %s930_s14, %s926_s13 }
  0x12   : > { %p57_p2 = scmp.eq.s32.totalorder %s950_s19, 0  ;;  %s1278_s22 = smov (%p34_p0, %s33_s22), 0 }
  0x13   : > { %1249 = sst [smem:[#allocation15_spill]] %s1278_s22  ;;  %s1280_s23 = smov (!%p34_p0, %s40_s23), %s946_s18 }
  0x14   : > { %s45_s25 = ssub.s32 %s942_s17, %s1278_s22  ;;  %p1042_p3 = por %p57_p2, %p56_p1 }
  0x15   : > { %p42_p4 = scmp.ge.s32.totalorder %s1280_s23, 2  ;;  %p62_p5 = scmp.ne.s32.totalorder %s926_s13, %s922_s12 }
  0x16   : > { %p63_p6 = scmp.eq.s32.totalorder %s583_s20, 0  ;;  %s107_s27 = sadd.s32 1, %s918_s11 }
  0x17   : > { %s1282_s23 = smov (%p42_p4, %s1280_s23), 0  ;;  %p117_p8 = scmp.ne.s32.totalorder %s918_s11, %s914_s10 }
  0x18   : > { %1251 = sst [smem:[#allocation16_spill]] %s1282_s23  ;;  %p1050_p7 = por %p63_p6, %p62_p5 }
  0x19   : > { %s44_s29 = ssub.s32 %s946_s18, %s1282_s23  ;;  %p118_p9 = scmp.eq.s32.totalorder %s583_s20, 3 }
  0x1a   : > { %s46_s30 = sor.u32 %s45_s25, %s44_s29  ;;  %p105_p10 = scmp.eq.s32.totalorder %s44_s29, 0 }
  0x1b   : > { %p47_p11 = scmp.eq.s32.totalorder %s46_s30, 0  ;;  %p1058_p12 = por %p118_p9, %p117_p8 }
  0x1c   : > { %s1063_s4 = scalar_select %p105_p10, %s918_s11, %s107_s27  }
  0x1d   : > { %s1066_s5 = scalar_select %p47_p11, %s930_s14, %s49_s24  }
  0x1e   : > { %1254 = sst [smem:[#allocation17_spill]] %s1063_s4  ;;  %p123_p13 = scmp.ne.s32.totalorder %s914_s10, %s910_s9 }
  0x1f   : > { %1255 = sst [smem:[#allocation18_spill]] %s1066_s5  ;;  %p124_p0 = scmp.eq.s32.totalorder %s584_s21, 3 }
  0x20   : > { %p657_p1 = scmp.lt.s32.totalorder %s950_s19, 4  ;;  %s1076_s7 = sand.u32 1, %s930_s14  }
  0x21   : > { %p1071_p2 = por %p124_p0, %p123_p13  ;;  %s587_s8 = sshll.u32 %s1076_s7, 3 }
  0x22   : > { %s588_s12 = sshll.u32 %s946_s18, 2  ;;  %s148_s25 = scalar_lea.vmem [#allocation3], %s587_s8 }
  0x23   : > { %s1256_s6 = scalar_select %p1071_p2, 1, 0 }
  0x24   : > { %s153_s20 = sadd.s32 %s942_s17, %s588_s12  ;;  %s156_s29 = sshll.u32 %s148_s25, 4  ;;  %s157_s29 = int_to_ptr.vmem [resolvable:$true] %s156_s29 }
  0x25   : > { %1257 = sst [smem:[#allocation19_spill]] %s1256_s6  ;;  %s589_s27 = sshll.u32 %s153_s20, 6 }
  0x26   : > { %s1258_s0 = sld [smem:[#allocation20_spill]]  ;;  %p1086_p4 = pnand %p657_p1, %p1042_p3 }
  0x27   : > { %s145_s22 = scalar_lea.sflag [#allocation4], %s1076_s7  ;;  %s783_s5 = scalar_lea.vmem %s157_s29, 128 }
  0x28   : > { %p772_p5 = pneg %p1086_p4  ;;  %p784_p6 = scmp.ne.s32.totalorder %s157_s29, %s783_s5 }
  0x29   : > { %s952_s8 = smov [#allocation3]  }
  0x2a   : > { %p786_p8 = pnand %p784_p6, %p772_p5  ;;  %s788_s12 = sshll.u32 %s952_s8, 4  ;;  %s789_s12 = int_to_ptr.vmem [resolvable:$false] %s788_s12 }
  0x2b   : > { %s790_s20 = scalar_lea.vmem %s789_s12, 256  ;;  %p791_p10 = scmp.lt.s32.totalorder %s157_s29, %s789_s12 }
  0x2c   : > { %s155_s21 = scalar_lea.hbm %s1258_s0, %s589_s27  ;;  %p787_p9 = pneg %p786_p8 }
  0x2d   : > { %p792_p3 = scmp.lt.s32.totalorder %s790_s20, %s783_s5 }
  0x2f   : > { %p793_p11 = por %p792_p3, %p791_p10 }
  0x31   : > { %p794_p13 = pnand %p793_p11, %p787_p9 }
  0x33   : > { %797 = shalt.err (!%p794_p13)
}
  0x34   : > { %s953_s26 = smov 128   ;;  %s954_s25 = smov 64  }
  0x35   : > { %s955_s27 = smov 4   ;;  %p593_p0 = scmp.ge.s32.totalorder %s950_s19, 1 }
  0x36   : > { %649 = dma.hbm_to_vmem [thread:$0]  (!%p1086_p4), %s155_s21, 128, %s157_s29, %s145_s22, %s953_s26, %s954_s25, %s955_s27  }
  0x37   : > { %p189_p1 = scmp.lt.s32.totalorder %s950_s19, 5  ;;  %s590_s5 = sshll.u32 %s1076_s7, 7 }
  0x38   : > { %s591_s30 = sshll.u32 %s946_s18, 6  ;;  %s170_s8 = scalar_lea.vmem [#allocation6], %s590_s5 }
  0x39   : > { %p1104_p6 = pnand %p593_p0, %p189_p1  ;;  %s181_s12 = sshll.u32 %s170_s8, 4  ;;  %s182_s12 = int_to_ptr.vmem [resolvable:$true] %s181_s12 }
  0x3a   : > { %s178_s20 = sadd.s32 %s942_s17, %s591_s30  ;;  %s167_s6 = scalar_lea.sflag [#allocation7], %s1076_s7 }
  0x3b   : > { %s592_s0 = sshll.u32 %s178_s20, 6  ;;  %s811_s9 = scalar_lea.vmem %s182_s12, 2048 }
  0x3c   : > { %s180_s11 = scalar_lea.hbm %s1237_s1, %s592_s0  ;;  %p812_p8 = scmp.ne.s32.totalorder %s182_s12, %s811_s9 }
  0x3d   : > { %s956_s22 = smov [#allocation6]  }
  0x3e   : > { %p814_p9 = pnand %p812_p8, %p772_p5  ;;  %s816_s29 = sshll.u32 %s956_s22, 4  ;;  %s817_s29 = int_to_ptr.vmem [resolvable:$false] %s816_s29 }
  0x3f   : > { %s818_s21 = scalar_lea.vmem %s817_s29, 4096  ;;  %p819_p3 = scmp.lt.s32.totalorder %s182_s12, %s817_s29 }
  0x40   : > { %p815_p10 = pneg %p814_p9  ;;  %p820_p11 = scmp.lt.s32.totalorder %s818_s21, %s811_s9 }
  0x42   : > { %p821_p13 = por %p820_p11, %p819_p3 }
  0x44   : > { %p822_p0 = pnand %p821_p13, %p815_p10 }
  0x46   : > { %825 = shalt.err (!%p822_p0)
}
  0x47   : > { %652 = dma.hbm_to_vmem [thread:$0]  (!%p1086_p4), %s180_s11, 2048, %s182_s12, %s167_s6, %s953_s26, %s954_s25, %s955_s27  }
  0x48   : > { %193 = sbr.rel (%p1104_p6) target bundleno = 390 (0x186), region = 28  ;;  %s195_s0 = sand.u32 (!%p1104_p6), 1, %s926_s13  }
  0x49   : > { %s594_s14 = sshll.u32 (!%p1104_p6), %s195_s0, 3  ;;  %s196_s4 = scalar_lea.sflag (!%p1104_p6), [#allocation4], %s195_s0 }
  0x4a   : > { %s1125_s7 = scalar_lea.vmem (!%p1104_p6), [#allocation3], %s594_s14 }
  0x4d   : > { %897 = dma.done.wait (%p1050_p7), %s196_s4, 128  }
  0x4e   : > { %899 = vsyncadd (%p1050_p7), %s196_s4, 4294967168  ;;  %s595_s9 = sshll.u32 %s195_s0, 7  ;;  %s205_s23 = scalar_lea.sflag [#allocation7], %s195_s0 }
  0x4f   : > { %s1131_s5 = scalar_lea.vmem [#allocation6], %s595_s9 }
  0x50   : > { %901 = dma.done.wait (%p1050_p7), %s205_s23, 2048  }
  0x51   : > { %903 = vsyncadd (%p1050_p7), %s205_s23, 4294965248  ;;  %s231_s11 = sand.u32 1, %s914_s10   ;;  %p597_p4 = scmp.ne.s32.totalorder %s934_s15, 0 }
  0x52   : > { %s596_s6 = sshll.u32 %s231_s11, 5 }
  0x53   : > { %s1140_s26 = scalar_lea.vmem [#allocation8], %s596_s6  ;;  %240 = sbr.rel (%p597_p4) target bundleno = 91 (0x5b), region = 40 }
  0x58   : > { %v957_v0 = vmov 0.0  }
  0x59   : > { %241 = vst [vmem:[#allocation2 + $0x10] sm:$0xff] %v957_v0  ;;  %242 = vst [vmem:[#allocation2] sm:$0xff] %v957_v0 }
  0x5a   : > { %243 = vst [vmem:[#allocation2 + $0x18] sm:$0xff] %v957_v0  ;;  %244 = vst [vmem:[#allocation2 + $0x8] sm:$0xff] %v957_v0 }
  0x5b PF: > { %v753_v1 = vld [vmem:[%s1131_s5 + $0x78] sm:$0xff]   ;;  %v755_v3 = vld [vmem:[%s1131_s5 + $0x70] sm:$0xff]   ;;  %v757_v5 = vld [vmem:[%s1131_s5 + $0x68] sm:$0xff]   ;;  %p615_p7 = scmp.ne.s32.totalorder %s934_s15, 1 }
  0x5c   : > { %v754_v2 = vld [vmem:[%s1131_s5 + $0x38] sm:$0xff]   ;;  %622 = vmatprep.subr.bf16.mxu0 %v753_v1  ;;  %v756_v4 = vld [vmem:[%s1131_s5 + $0x30] sm:$0xff]   ;;  %v758_v6 = vld [vmem:[%s1131_s5 + $0x28] sm:$0xff]  }
  0x5d   : > { %623 = vmatpush3.bf16.xpose.msra.mxu0 %v754_v2  ;;  %v759_v7 = vld [vmem:[%s1131_s5 + $0x60] sm:$0xff]   ;;  %v769_v8 = vld [vmem:[%s1125_s7] sm:$0xff]   ;;  %v765_v14 = vld [vmem:[%s1131_s5 + $0x48] sm:$0xff]  }
  0x5e   : > { %624 = vmatprep.subr.bf16.mxu0 %v755_v3  ;;  %638 = vmatprep.mubr.bf16.mxu0 %v769_v8  ;;  %v760_v9 = vld [vmem:[%s1131_s5 + $0x20] sm:$0xff]   ;;  %v761_v10 = vld [vmem:[%s1131_s5 + $0x58] sm:$0xff]   ;;  %v763_v12 = vld [vmem:[%s1131_s5 + $0x50] sm:$0xff]  }
  0x5f   : > { %v762_v11 = vld [vmem:[%s1131_s5 + $0x18] sm:$0xff]   ;;  %v764_v13 = vld [vmem:[%s1131_s5 + $0x10] sm:$0xff]   ;;  %v766_v15 = vld [vmem:[%s1131_s5 + $0x8] sm:$0xff]  }
  0x60   : > { %v767_v16 = vld [vmem:[%s1131_s5 + $0x40] sm:$0xff]   ;;  %v246_v20 = vld [vmem:[#allocation2] sm:$0xff] }
  0x61   : > { %v768_v17 = vld [vmem:[%s1131_s5] sm:$0xff]   ;;  %v247_v23 = vld [vmem:[#allocation2 + $0x18] sm:$0xff]  ;;  %v248_v26 = vld [vmem:[#allocation2 + $0x8] sm:$0xff] }
  0x62   : > { %v245_v18 = vld [vmem:[#allocation2 + $0x10] sm:$0xff] }
  0x65   : > { %625 = vmatpush3.bf16.xpose.msra.mxu0 %v756_v4 }
  0x66   : > { %626 = vmatprep.subr.bf16.mxu0 %v757_v5 }
  0x6d   : > { %627 = vmatpush3.bf16.xpose.msra.mxu0 %v758_v6 }
  0x6e   : > { %628 = vmatprep.subr.bf16.mxu0 %v759_v7 }
  0x75   : > { %629 = vmatpush3.bf16.xpose.msra.mxu0 %v760_v9 }
  0x76   : > { %630 = vmatprep.subr.bf16.mxu0 %v761_v10 }
  0x7d   : > { %631 = vmatpush3.bf16.xpose.msra.mxu0 %v762_v11 }
  0x7e   : > { %632 = vmatprep.subr.bf16.mxu0 %v763_v12 }
  0x85   : > { %633 = vmatpush3.bf16.xpose.msra.mxu0 %v764_v13 }
  0x86   : > { %634 = vmatprep.subr.bf16.mxu0 %v765_v14 }
  0x8d   : > { %635 = vmatpush3.bf16.xpose.msra.mxu0 %v766_v15 }
  0x8e   : > { %636 = vmatprep.subr.bf16.mxu0 %v767_v16 }
  0x95   : > { %637 = vmatpush3.bf16.xpose.msra.mxu0 %v768_v17 }
  0x9c   : > { %639 = vmatmul.mubr.bf16.vlgmr.msra.gmra.mxu0 %v769_v8 }
 0x15c   : > { %v419_v19 = vpop.f32.mrf.mxu0 }
 0x15d   : > { %v428_v21 = vadd.f32 %v419_v19, %v245_v18 }
 0x15e   : > { %v421_v22 = vpop.f32.mrf.mxu0 }
 0x15f   : > { %432 = vst [vmem:[#allocation2 + $0x10] sm:$0xff] %v428_v21  ;;  %v429_v24 = vadd.f32 %v421_v22, %v246_v20 }
 0x160   : > { %v423_v25 = vpop.f32.mrf.mxu0 }
 0x161   : > { %433 = vst [vmem:[#allocation2] sm:$0xff] %v429_v24  ;;  %v430_v27 = vadd.f32 %v423_v25, %v247_v23  ;;  %439 = sbr.rel (%p615_p7) target bundleno = 366 (0x16e), region = 44 }
 0x162   : > { %v425_v28 = vpop.f32.mrf.mxu0 }
 0x163   : > { %434 = vst [vmem:[#allocation2 + $0x18] sm:$0xff] %v430_v27  ;;  %v431_v29 = vadd.f32 %v425_v28, %v248_v26 }
 0x165   : > { %435 = vst [vmem:[#allocation2 + $0x8] sm:$0xff] %v431_v29 }
 0x166   : > { %v440_v30 = vld [vmem:[#allocation2 + $0x10] sm:$0xff] }
 0x167   : > { %444 = vst [vmem:[%s1140_s26] sm:$0xff] %v440_v30 }
 0x168   : > { %v441_v31 = vld [vmem:[#allocation2] sm:$0xff] }
 0x169   : > { %445 = vst [vmem:[%s1140_s26 + $0x8] sm:$0xff] %v441_v31 }
 0x16a   : > { %v442_v32 = vld [vmem:[#allocation2 + $0x18] sm:$0xff] }
 0x16b   : > { %446 = vst [vmem:[%s1140_s26 + $0x10] sm:$0xff] %v442_v32 }
 0x16c   : > { %v443_v33 = vld [vmem:[#allocation2 + $0x8] sm:$0xff] }
 0x16d   : > { %447 = vst [vmem:[%s1140_s26 + $0x18] sm:$0xff] %v443_v33 }
 0x16e PF: > { %s621_s28 = sshll.u32 %s938_s16, 9  ;;  %s464_s24 = sshll.u32 %s1140_s26, 4  ;;  %s1172_s24 = int_to_ptr.vmem [resolvable:$true] %s464_s24 }
 0x16f   : > { %s1169_s27 = scalar_lea.hbm %s1238_s2, %s621_s28  ;;  %s1176_s30 = scalar_lea.sflag [#allocation5], %s231_s11 }
 0x170   : > { %s826_s8 = scalar_lea.vmem %s1172_s24, 512  ;;  %s958_s16 = smov [#allocation8]  }
 0x171   : > { %p827_p5 = scmp.ne.s32.totalorder %s1172_s24, %s826_s8  ;;  %s830_s12 = sshll.u32 %s958_s16, 4  ;;  %s831_s12 = int_to_ptr.vmem [resolvable:$false] %s830_s12 }
 0x172   : > { %s832_s20 = scalar_lea.vmem %s831_s12, 1024  ;;  %p833_p8 = scmp.lt.s32.totalorder %s1172_s24, %s831_s12 }
 0x173   : > { %p828_p1 = pnand %p827_p5, %p1058_p12  ;;  %p834_p9 = scmp.lt.s32.totalorder %s832_s20, %s826_s8 }
 0x175   : > { %p829_p6 = pneg %p828_p1  ;;  %p835_p10 = por %p834_p9, %p833_p8 }
 0x177   : > { %p836_p3 = pnand %p835_p10, %p829_p6 }
 0x179   : > { %839 = shalt.err (!%p836_p3)
}
 0x17a   : > { %s840_s22 = scalar_lea.hbm %s1169_s27, 512  ;;  %s844_s0 = scalar_lea.hbm %s1238_s2, 1024 }
 0x17b   : > { %p841_p11 = scmp.ne.s32.totalorder %s1169_s27, %s840_s22  ;;  %p845_p4 = scmp.lt.s32.totalorder %s1169_s27, %s1238_s2 }
 0x17c   : > { %p846_p7 = scmp.lt.s32.totalorder %s844_s0, %s840_s22 }
 0x17d   : > { %p842_p13 = pnand %p841_p11, %p1058_p12 }
 0x17e   : > { %p847_p5 = por %p846_p7, %p845_p4 }
 0x17f   : > { %p843_p0 = pneg %p842_p13 }
 0x181   : > { %p848_p1 = pnand %p847_p5, %p843_p0 }
 0x183   : > { %851 = shalt.err (!%p848_p1)
}
 0x184   : > { %s959_s7 = smov 256   ;;  %s960_s9 = smov 16  }
 0x185   : > { %644 = dma.vmem_to_hbm [thread:$0]  (%p1058_p12), %s1172_s24, 512, %s1169_s27, %s1176_s30, %s959_s7, %s959_s7, %s960_s9  }
 0x186 PF: > { %s1261_s23 = sld [smem:[#allocation12_spill]]  ;;  %p658_p6 = scmp.ge.s32.totalorder %s950_s19, 2 }
 0x188   : > { %p654_p8 = pnand %p658_p6, %p1071_p2 }
 0x18a   : > { %p655_p9 = pneg %p654_p8 }
 0x18c   : > { %s479_s11 = sand.u32 1, %s1261_s23  }
 0x18d   : > { %s480_s6 = scalar_lea.sflag [#allocation5], %s479_s11 }
 0x18e   : > { %905 = dma.done.wait (%p655_p9), %s480_s6, 512  }
 0x18f   : > { %907 = vsyncadd (%p655_p9), %s480_s6, 4294966784  ;;  %s21_s19 = sadd.s32 1, %s950_s19   ;;  %s1263_s26 = sld [smem:[#allocation13_spill]] }
 0x190   : > { %p18_p10 = scmp.ge.s32.totalorder %s21_s19, 6   ;;  %s1264_s11 = sld [smem:[#allocation17_spill]] }
 0x191   : > { %s1265_s3 = sld [smem:[#allocation14_spill]]  ;;  %s1269_s9 = smov %s914_s10 }
 0x192   : > { %s1266_s14 = sld [smem:[#allocation18_spill]]  ;;  %s1271_s12 = smov %s926_s13 }
 0x193   : > { %s1267_s28 = sld [smem:[#allocation15_spill]]  ;;  %s1273_s15 = smov %s942_s17 }
 0x194   : > { %s1268_s25 = sld [smem:[#allocation16_spill]]  ;;  %s1274_s16 = smov %s946_s18 }
 0x195   : > { %s1270_s10 = smov %s1263_s26 }
 0x196   :  { %20 = sbr.rel (!%p18_p10) target bundleno = 13 (0xd), region = 94 }
 0x197   : > { %s1272_s13 = smov %s1265_s3 }
 0x199   : > { %s1275_s17 = smov %s1267_s28 }
 0x19a   : > { %s1276_s18 = smov %s1268_s25 }
 0x19b   :  { %485 = vsyncpa [#allocation4], 1 }
 0x19c   :  { %487 = vsyncpa [#allocation4 + $0x1], 1 }
 0x19d   :  { %488 = vsyncpa [#allocation7], 1 }
 0x19e   :  { %490 = vsyncpa [#allocation7 + $0x1], 1 }
 0x19f   :  { %491 = vsyncpa [#allocation5], 1 }
 0x1a0   :  { %493 = vsyncpa [#allocation5 + $0x1], 1 }

</bundles_post_ra>
